<compile_context>
chip_gen: v7x
topology: tpu7x:2x2x1
jax: 0.10.0
libtpu: 0.0.40
codegen_flags: <defaults>
</compile_context>

<pallas_src>
import functools

import jax
import jax.numpy as jnp
import numpy as np
from jax.experimental import pallas as pl
from jax.experimental.pallas import tpu as pltpu

_LANE = 128


def _loss_core(anchor_ref, contrast_ref, out_ref, pos_fn, *, loss_scale):
    """Shared body.  pos_fn() -> boolean [TILE_A, N] same-class mask
    (self-pairs are excluded here)."""
    tile_a = anchor_ref.shape[0]
    n = contrast_ref.shape[0]

    # bf16 x bf16 -> f32 on the MXU; 1/temperature was folded into the anchor
    # rows in the wrapper so no [TILE_A, N] scaling is needed.
    s = jnp.einsum("ad,nd->an", anchor_ref[...], contrast_ref[...],
                   preferred_element_type=jnp.float32)              # [TILE_A, N]

    # Self-exclusion mask from global row/col indices (no [A, N] mask DMA).
    row = (pl.program_id(0) * tile_a
           + jax.lax.broadcasted_iota(jnp.int32, (tile_a, n), 0))
    col = jax.lax.broadcasted_iota(jnp.int32, (tile_a, n), 1)
    is_self = row == col

    pos = pos_fn() & jnp.logical_not(is_self)                       # bool [TILE_A, N]

    # Numerically-stable masked log-softmax; all elementwise math in f32
    # (v5e has no bf16 VPU/EUP).  No f32 positive-mask or log_prob [TILE_A, N]
    # temporaries are materialized.
    logits = s - jnp.max(s, axis=1, keepdims=True)                  # [TILE_A, N]
    exp_l = jnp.where(is_self, 0.0, jnp.exp(logits))
    log_denom = jnp.log(jnp.sum(exp_l, axis=1, keepdims=True))      # [TILE_A, 1]

    sum_pos = jnp.sum(jnp.where(pos, 1.0, 0.0), axis=1, keepdims=True)
    sum_pos_logits = jnp.sum(jnp.where(pos, logits, 0.0), axis=1, keepdims=True)

    # mean_log_prob_pos = sum(pos*(logits - log_denom)) / sum(pos).  Rows with
    # zero positives give 0/0 = NaN, exactly matching the torch reference.
    mean_log_prob_pos = (sum_pos_logits - log_denom * sum_pos) / sum_pos
    loss = loss_scale * mean_log_prob_pos                           # [TILE_A, 1]

    # Lane-dense store (last dim padded to 128); wrapper slices column 0.
    out_ref[...] = jnp.broadcast_to(loss, out_ref.shape).astype(out_ref.dtype)


def _kernel_ids(aid_ref, cid_ref, anchor_ref, contrast_ref, out_ref, *, loss_scale):
    # SimCLR / SupCon(labels): positives rebuilt from two tiny int32 id vectors.
    _loss_core(anchor_ref, contrast_ref, out_ref,
               lambda: aid_ref[...] == cid_ref[...],   # [TILE_A,1] vs [1,N] broadcast
               loss_scale=loss_scale)


def _kernel_mask(mask_ref, anchor_ref, contrast_ref, out_ref, *, loss_scale):
    # Arbitrary user mask, streamed as int8 blocks (binary semantics).
    _loss_core(anchor_ref, contrast_ref, out_ref,
               lambda: mask_ref[...].astype(jnp.int32) != 0,
               loss_scale=loss_scale)


def _vmem_budget():
    """(vmem_limit_bytes for the compiler, byte budget for the tile picker)."""
    try:
        physical = int(pltpu.get_tpu_info().vmem_capacity_bytes)
    except Exception:
        physical = 64 * 1024 * 1024      # conservative: v7x per-TensorCore VMEM
    vmem_limit = int(physical * 0.80)    # ~102 MiB on v5e/v6e, ~51 MiB on v7x
    budget = int(vmem_limit * 0.85)      # headroom for under-counted temporaries
    return vmem_limit, budget


def _pick_tile_a(a_rows, n_cols, dim, budget, *, row_align, mask_stream):
    """Anchor rows per grid step: prefer multiples of 256/128 (full MXU cadence,
    unmasked stores), keep >=2 grid steps for v7x megacore when A is large, and
    fit the per-step working set into `budget` bytes of VMEM."""
    resident = 2 * n_cols * dim * 2 + 8 * n_cols     # bf16 contrast slab (worst case x2 bufs) + ids
    per_row = (32 * n_cols                           # f32/int32 [TILE_A, N] temporaries
               + 4 * dim                             # bf16 anchor tile, double-buffered
               + 8 * _LANE + 16)                     # f32 out tile (x2) + id column (x2)
    if mask_stream:
        per_row += 2 * n_cols                        # int8 mask block, double-buffered
    # TODO(synk): if the resident contrast slab itself overflows VMEM (huge N*D
    # on v7x), a flash-style online-softmax N-axis grid is required; not done here.
    avail = max(budget - resident, per_row * row_align)
    cap = min(max(int(avail // per_row), row_align), 1024)
    if a_rows >= 256:
        cap = min(cap, int(pl.cdiv(a_rows, 2)))      # >=2 steps so both v7x cores get work
    if a_rows <= cap:
        return a_rows                                # single full tile, no padding
    for align in (256, 128, row_align):
        t = (cap // align) * align
        if t >= align:
            return t
    return row_align


def contrast_loss(features, labels=None, mask=None, *, temperature=0.07,
                  contrast_mode="all", base_temperature=0.07):
    """JAX/Pallas port of ContrastLoss.forward (return_logits=False path)."""
    if features.ndim < 3:
        raise ValueError("`features` needs to be [bsz, n_views, ...]")
    if labels is not None and mask is not None:
        raise ValueError("Cannot define both `labels` and `mask`")

    bsz, n_views = features.shape[0], features.shape[1]
    feats = features.reshape(bsz, n_views, -1).astype(jnp.float32)
    dim = feats.shape[-1]

    # torch.cat(torch.unbind(features, dim=1), dim=0): view-major ordering.
    contrast_f32 = jnp.transpose(feats, (1, 0, 2)).reshape(n_views * bsz, dim)
    contrast_count = n_views

    if contrast_mode == "one":
        anchor_f32 = feats[:, 0]
        anchor_count = 1
    elif contrast_mode == "all":
        anchor_f32 = contrast_f32
        anchor_count = contrast_count
    else:
        raise ValueError(f"Unknown mode: {contrast_mode}")

    a_rows = anchor_count * bsz
    n_cols = contrast_count * bsz
    inv_temp = 1.0 / float(temperature)
    loss_scale = -(float(temperature) / float(base_temperature))

    # DMA + MXU operands in bf16 (half the HBM bytes / resident slab).
    # NOTE: bf16 matmul operands cost ~3 decimal digits vs a pure-f32 torch run.
    anchor_bf16 = (anchor_f32 * inv_temp).astype(jnp.bfloat16)
    contrast_bf16 = contrast_f32.astype(jnp.bfloat16)

    vmem_limit, budget = _vmem_budget()
    mask_stream = mask is not None
    row_align = 32 if mask_stream else 16            # int8 / bf16 sublane tiling
    tile_a = _pick_tile_a(a_rows, n_cols, dim, budget,
                          row_align=row_align, mask_stream=mask_stream)
    a_pad = int(pl.cdiv(a_rows, tile_a)) * tile_a    # pad ragged A; rows are independent
    grid = (a_pad // tile_a,)

    if a_pad != a_rows:
        anchor_bf16 = jnp.pad(anchor_bf16, ((0, a_pad - a_rows), (0, 0)))

    anchor_spec = pl.BlockSpec((tile_a, dim), lambda i: (i, 0))
    out_spec = pl.BlockSpec((tile_a, _LANE), lambda i: (i, 0))
    out_shape = jax.ShapeDtypeStruct((a_pad, _LANE), jnp.float32)
    cparams = pltpu.CompilerParams(dimension_semantics=("parallel",),
                                   vmem_limit_bytes=vmem_limit)

    if mask is None:
        # SimCLR / SupCon(labels): positives from two tiny id vectors; no [A,N]
        # mask array is ever built or DMA'd.
        if labels is None:
            base_ids = jnp.arange(bsz, dtype=jnp.int32)
        else:
            base_ids = labels.reshape(-1).astype(jnp.int32)
            if base_ids.shape[0] != bsz:
                raise ValueError("Num of labels does not match num of features")
        anchor_ids = jnp.tile(base_ids, anchor_count).reshape(a_rows, 1)
        if a_pad != a_rows:
            anchor_ids = jnp.pad(anchor_ids, ((0, a_pad - a_rows), (0, 0)))
        contrast_ids = jnp.tile(base_ids, contrast_count).reshape(1, n_cols)

        kernel = functools.partial(_kernel_ids, loss_scale=loss_scale)
        extra_specs = [
            pl.BlockSpec((tile_a, 1), lambda i: (i, 0)),   # anchor ids
            pl.BlockSpec((1, n_cols), lambda i: (0, 0)),   # contrast ids (resident)
        ]
        extra_operands = (anchor_ids, contrast_ids)
    else:
        # Arbitrary user mask: streamed as int8 [TILE_A, N] blocks (4x less DMA
        # than f32).  TODO(synk): non-binary (weighted) user masks are binarized.
        mask_i8 = jnp.tile((jnp.asarray(mask) != 0).astype(jnp.int8),
                           (anchor_count, contrast_count))
        if a_pad != a_rows:
            mask_i8 = jnp.pad(mask_i8, ((0, a_pad - a_rows), (0, 0)))
        kernel = functools.partial(_kernel_mask, loss_scale=loss_scale)
        extra_specs = [pl.BlockSpec((tile_a, n_cols), lambda i: (i, 0))]
        extra_operands = (mask_i8,)

    def run(single_buffer_contrast):
        if single_buffer_contrast:
            # The contrast slab's block index never changes: a single pipeline
            # buffer halves the largest VMEM allocation (key on v7x's 64 MiB).
            contrast_spec = pl.BlockSpec((n_cols, dim), lambda i: (0, 0),
                                         pipeline_mode=pl.Buffered(1))
        else:
            contrast_spec = pl.BlockSpec((n_cols, dim), lambda i: (0, 0))
        return pl.pallas_call(
            kernel,
            out_shape=out_shape,
            grid_spec=pltpu.PrefetchScalarGridSpec(
                num_scalar_prefetch=0,
                grid=grid,
                in_specs=list(extra_specs) + [anchor_spec, contrast_spec],
                out_specs=out_spec),
            compiler_params=cparams,
        )(*extra_operands, anchor_bf16, contrast_bf16)

    try:
        loss_padded = run(True)
    except Exception:
        # pl.Buffered(1) not supported by this build: fall back to the default
        # double-buffered spec (slab is still DMA'd once; block index constant).
        loss_padded = run(False)

    return loss_padded[:a_rows, 0].reshape(anchor_count, bsz)


def _reference_loss(features, labels=None, mask=None, *, temperature=0.07,
                    contrast_mode="all", base_temperature=0.07,
                    matmul_dtype=jnp.float32):
    """Pure-JAX reference of the torch forward.  matmul_dtype=bfloat16 mirrors
    the kernel's MXU precision for a tighter comparison."""
    bsz, n_views = features.shape[0], features.shape[1]
    feats = features.reshape(bsz, n_views, -1).astype(jnp.float32)
    dim = feats.shape[-1]
    z = jnp.transpose(feats, (1, 0, 2)).reshape(n_views * bsz, dim)

    if labels is None and mask is None:
        m_small = jnp.eye(bsz, dtype=jnp.float32)
    elif labels is not None:
        l = labels.reshape(-1, 1)
        m_small = (l == l.T).astype(jnp.float32)
    else:
        m_small = mask.astype(jnp.float32)

    contrast_count = n_views
    if contrast_mode == "one":
        anchor = feats[:, 0]
        anchor_count = 1
    else:
        anchor = z
        anchor_count = contrast_count

    a = (anchor * (1.0 / temperature)).astype(matmul_dtype)
    adc = jnp.dot(a, z.astype(matmul_dtype).T, preferred_element_type=jnp.float32)
    logits = adc - jnp.max(adc, axis=1, keepdims=True)

    a_rows = anchor_count * bsz
    mask_full = jnp.tile(m_small, (anchor_count, contrast_count))
    logits_mask = jnp.ones_like(mask_full).at[
        jnp.arange(a_rows), jnp.arange(a_rows)].set(0.0)
    mask_full = mask_full * logits_mask
    exp_logits = jnp.exp(logits) * logits_mask
    log_prob = logits - jnp.log(exp_logits.sum(1, keepdims=True))
    mlpp = (mask_full * log_prob).sum(1) / mask_full.sum(1)
    loss = -(temperature / base_temperature) * mlpp
    return loss.reshape(anchor_count, bsz)


if __name__ == "__main__":
    key = jax.random.PRNGKey(0)
    bsz, n_views, dim = 8, 2, 32
    features = jax.random.normal(key, (bsz, n_views, dim), dtype=jnp.float32)
    # L2-normalize per feature vector (typical SupCon/SimCLR usage).
    features = features / jnp.linalg.norm(features, axis=-1, keepdims=True)

    # 1) SimCLR path (labels=None, mask=None), contrast_mode='all'.
    loss = contrast_loss(features)                       # [n_views, bsz]
    jax.block_until_ready(loss)
    ref_bf16 = _reference_loss(features, matmul_dtype=jnp.bfloat16)
    ref_f32 = _reference_loss(features)
    np.testing.assert_allclose(np.asarray(loss), np.asarray(ref_bf16),
                               rtol=2e-2, atol=2e-2)
    np.testing.assert_allclose(np.asarray(loss), np.asarray(ref_f32),
                               rtol=5e-2, atol=5e-2)

    # 2) SupCon path with labels.
    labels = jnp.array([0, 1, 2, 3, 0, 1, 2, 3], dtype=jnp.int32)
    loss_lab = contrast_loss(features, labels=labels)
    jax.block_until_ready(loss_lab)
    ref_lab = _reference_loss(features, labels=labels, matmul_dtype=jnp.bfloat16)
    np.testing.assert_allclose(np.asarray(loss_lab), np.asarray(ref_lab),
                               rtol=2e-2, atol=2e-2)

    # 3) Explicit-mask fallback path (streamed int8 mask).
    user_mask = jnp.ones((bsz, bsz), dtype=jnp.float32)
    loss_mask = contrast_loss(features, mask=user_mask)
    jax.block_until_ready(loss_mask)
    ref_mask = _reference_loss(features, mask=user_mask, matmul_dtype=jnp.bfloat16)
    np.testing.assert_allclose(np.asarray(loss_mask), np.asarray(ref_mask),
                               rtol=2e-2, atol=2e-2)

    # 4) contrast_mode='one'.
    loss_one = contrast_loss(features, contrast_mode="one")
    jax.block_until_ready(loss_one)
    ref_one = _reference_loss(features, contrast_mode="one",
                              matmul_dtype=jnp.bfloat16)
    np.testing.assert_allclose(np.asarray(loss_one), np.asarray(ref_one),
                               rtol=2e-2, atol=2e-2)

    print("KERNEL_OK")
</pallas_src>

<mosaic_0001>
module attributes {stable_mosaic.version = 11 : i64} {
  func.func @_kernel_ids(%arg0: i32, %arg1: memref<16x1xi32, #tpu.memory_space<vmem>>, %arg2: memref<1x16xi32, #tpu.memory_space<vmem>>, %arg3: memref<16x32xbf16, #tpu.memory_space<vmem>>, %arg4: memref<16x32xbf16, #tpu.memory_space<vmem>>, %arg5: memref<16x128xf32, #tpu.memory_space<vmem>>) attributes {dimension_semantics = [#tpu.dimension_semantics<parallel>], iteration_bounds = array<i64: 1>, scalar_prefetch = 0 : i64, scratch_operands = 0 : i64, tpu.core_type = #tpu.core_type<tc>, window_params = [{transform_indices = @transform_0, window_bounds = array<i64: 16, 1>}, {pipeline_mode = #tpu.pipeline_mode<synchronous>, transform_indices = @transform_1, window_bounds = array<i64: 1, 16>}, {transform_indices = @transform_2, window_bounds = array<i64: 16, 32>}, {pipeline_mode = #tpu.pipeline_mode<synchronous>, transform_indices = @transform_3, window_bounds = array<i64: 16, 32>}, {transform_indices = @transform_4, window_bounds = array<i64: 16, 128>}]} {
    %c0 = arith.constant 0 : index
    %c0_0 = arith.constant 0 : index
    %0 = vector.load %arg3[%c0, %c0_0] : memref<16x32xbf16, #tpu.memory_space<vmem>>, vector<16x32xbf16>
    %c0_1 = arith.constant 0 : index
    %c0_2 = arith.constant 0 : index
    %1 = vector.load %arg4[%c0_1, %c0_2] : memref<16x32xbf16, #tpu.memory_space<vmem>>, vector<16x32xbf16>
    "tpu.trace_start"() <{level = 10 : i32, message = "ad,nd->an"}> : () -> ()
    %cst = arith.constant dense<0.000000e+00> : vector<16x16xf32>
    %2 = tpu.matmul %0, %1, %cst {dimension_numbers = #tpu.dot_dimension_numbers<[1], [1], [0], [0], [0, 0, 1, 0], [], []>} : vector<16x32xbf16>, vector<16x32xbf16>, vector<16x16xf32> -> vector<16x16xf32>
    "tpu.trace_stop"() : () -> ()
    %c16_i32 = arith.constant 16 : i32
    %3 = arith.muli %arg0, %c16_i32 : i32
    %4 = tpu.iota {dimensions = array<i32: 0>} : vector<16x16xi32>
    %5 = vector.broadcast %3 : i32 to vector<16x16xi32>
    %6 = arith.addi %5, %4 : vector<16x16xi32>
    %7 = tpu.iota {dimensions = array<i32: 1>} : vector<16x16xi32>
    %8 = arith.cmpi eq, %6, %7 : vector<16x16xi32>
    %c0_3 = arith.constant 0 : index
    %c0_4 = arith.constant 0 : index
    %9 = vector.load %arg1[%c0_3, %c0_4] : memref<16x1xi32, #tpu.memory_space<vmem>>, vector<16x1xi32>
    %c0_5 = arith.constant 0 : index
    %c0_6 = arith.constant 0 : index
    %10 = vector.load %arg2[%c0_5, %c0_6] : memref<1x16xi32, #tpu.memory_space<vmem>>, vector<1x16xi32>
    %11 = vector.broadcast %9 : vector<16x1xi32> to vector<16x16xi32>
    %12 = vector.broadcast %10 : vector<1x16xi32> to vector<16x16xi32>
    %13 = arith.cmpi eq, %11, %12 : vector<16x16xi32>
    %cst_7 = arith.constant dense<true> : vector<16x16xi1>
    %14 = arith.xori %8, %cst_7 : vector<16x16xi1>
    %15 = arith.andi %13, %14 : vector<16x16xi1>
    %cst_8 = arith.constant dense<0xFF800000> : vector<16xf32>
    %16 = vector.multi_reduction <maximumf>, %2, %cst_8 [1] : vector<16x16xf32> to vector<16xf32>
    %17 = vector.shape_cast %16 : vector<16xf32> to vector<16x1xf32>
    %18 = vector.broadcast %17 : vector<16x1xf32> to vector<16x16xf32>
    %19 = arith.subf %2, %18 : vector<16x16xf32>
    %20 = math.exp %19 : vector<16x16xf32>
    %cst_9 = arith.constant 0.000000e+00 : f32
    %21 = vector.broadcast %cst_9 : f32 to vector<16x16xf32>
    %22 = arith.select %8, %21, %20 : vector<16x16xi1>, vector<16x16xf32>
    %cst_10 = arith.constant dense<0.000000e+00> : vector<16xf32>
    %23 = vector.multi_reduction <add>, %22, %cst_10 [1] : vector<16x16xf32> to vector<16xf32>
    %24 = vector.shape_cast %23 : vector<16xf32> to vector<16x1xf32>
    %25 = math.log %24 : vector<16x1xf32>
    %cst_11 = arith.constant 1.000000e+00 : f32
    %cst_12 = arith.constant 0.000000e+00 : f32
    %26 = vector.broadcast %cst_11 : f32 to vector<16x16xf32>
    %27 = vector.broadcast %cst_12 : f32 to vector<16x16xf32>
    %28 = arith.select %15, %26, %27 : vector<16x16xi1>, vector<16x16xf32>
    %cst_13 = arith.constant dense<0.000000e+00> : vector<16xf32>
    %29 = vector.multi_reduction <add>, %28, %cst_13 [1] : vector<16x16xf32> to vector<16xf32>
    %30 = vector.shape_cast %29 : vector<16xf32> to vector<16x1xf32>
    %cst_14 = arith.constant 0.000000e+00 : f32
    %31 = vector.broadcast %cst_14 : f32 to vector<16x16xf32>
    %32 = arith.select %15, %19, %31 : vector<16x16xi1>, vector<16x16xf32>
    %cst_15 = arith.constant dense<0.000000e+00> : vector<16xf32>
    %33 = vector.multi_reduction <add>, %32, %cst_15 [1] : vector<16x16xf32> to vector<16xf32>
    %34 = vector.shape_cast %33 : vector<16xf32> to vector<16x1xf32>
    %35 = arith.mulf %25, %30 : vector<16x1xf32>
    %36 = arith.subf %34, %35 : vector<16x1xf32>
    %37 = arith.divf %36, %30 : vector<16x1xf32>
    %cst_16 = arith.constant -1.000000e+00 : f32
    %38 = vector.broadcast %cst_16 : f32 to vector<16x1xf32>
    %39 = arith.mulf %38, %37 : vector<16x1xf32>
    %40 = vector.shape_cast %39 : vector<16x1xf32> to vector<16x1xf32>
    %41 = vector.broadcast %40 : vector<16x1xf32> to vector<16x128xf32>
    %c0_17 = arith.constant 0 : index
    %c0_18 = arith.constant 0 : index
    %42 = vector.load %arg5[%c0_17, %c0_18] : memref<16x128xf32, #tpu.memory_space<vmem>>, vector<16x128xf32>
    tpu.vector_store %arg5[%c0_17, %c0_18], %41 {strides = array<i32>} : memref<16x128xf32, #tpu.memory_space<vmem>>, vector<16x128xf32>,
    return
  }
  func.func @transform_0(%arg0: i32) -> (i32, i32) {
    %c0_i32 = arith.constant 0 : i32
    %c0_i32_0 = arith.constant 0 : i32
    return %arg0, %c0_i32 : i32, i32
  }
  func.func @transform_1(%arg0: i32) -> (i32, i32) {
    %c0_i32 = arith.constant 0 : i32
    %c0_i32_0 = arith.constant 0 : i32
    %c0_i32_1 = arith.constant 0 : i32
    return %c0_i32, %c0_i32_0 : i32, i32
  }
  func.func @transform_2(%arg0: i32) -> (i32, i32) {
    %c0_i32 = arith.constant 0 : i32
    %c0_i32_0 = arith.constant 0 : i32
    return %arg0, %c0_i32 : i32, i32
  }
  func.func @transform_3(%arg0: i32) -> (i32, i32) {
    %c0_i32 = arith.constant 0 : i32
    %c0_i32_0 = arith.constant 0 : i32
    %c0_i32_1 = arith.constant 0 : i32
    return %c0_i32, %c0_i32_0 : i32, i32
  }
  func.func @transform_4(%arg0: i32) -> (i32, i32) {
    %c0_i32 = arith.constant 0 : i32
    %c0_i32_0 = arith.constant 0 : i32
    return %arg0, %c0_i32 : i32, i32
  }
}

module attributes {stable_mosaic.version = 11 : i64} {
  func.func @_kernel_ids(%arg0: i32, %arg1: memref<16x1xi32, #tpu.memory_space<vmem>>, %arg2: memref<1x16xi32, #tpu.memory_space<vmem>>, %arg3: memref<16x32xbf16, #tpu.memory_space<vmem>>, %arg4: memref<16x32xbf16, #tpu.memory_space<vmem>>, %arg5: memref<16x128xf32, #tpu.memory_space<vmem>>) attributes {dimension_semantics = [#tpu.dimension_semantics<parallel>], iteration_bounds = array<i64: 1>, scalar_prefetch = 0 : i64, scratch_operands = 0 : i64, tpu.core_type = #tpu.core_type<tc>, window_params = [{transform_indices = @transform_0, window_bounds = array<i64: 16, 1>}, {pipeline_mode = #tpu.pipeline_mode<synchronous>, transform_indices = @transform_1, window_bounds = array<i64: 1, 16>}, {transform_indices = @transform_2, window_bounds = array<i64: 16, 32>}, {pipeline_mode = #tpu.pipeline_mode<synchronous>, transform_indices = @transform_3, window_bounds = array<i64: 16, 32>}, {transform_indices = @transform_4, window_bounds = array<i64: 16, 128>}]} {
    %c0 = arith.constant 0 : index
    %c0_0 = arith.constant 0 : index
    %0 = vector.load %arg3[%c0, %c0_0] : memref<16x32xbf16, #tpu.memory_space<vmem>>, vector<16x32xbf16>
    %c0_1 = arith.constant 0 : index
    %c0_2 = arith.constant 0 : index
    %1 = vector.load %arg4[%c0_1, %c0_2] : memref<16x32xbf16, #tpu.memory_space<vmem>>, vector<16x32xbf16>
    "tpu.trace_start"() <{level = 10 : i32, message = "ad,nd->an"}> : () -> ()
    %cst = arith.constant dense<0.000000e+00> : vector<16x16xf32>
    %2 = tpu.matmul %0, %1, %cst {dimension_numbers = #tpu.dot_dimension_numbers<[1], [1], [0], [0], [0, 0, 1, 0], [], []>} : vector<16x32xbf16>, vector<16x32xbf16>, vector<16x16xf32> -> vector<16x16xf32>
    "tpu.trace_stop"() : () -> ()
    %c16_i32 = arith.constant 16 : i32
    %3 = arith.muli %arg0, %c16_i32 : i32
    %4 = tpu.iota {dimensions = array<i32: 0>} : vector<16x16xi32>
    %5 = vector.broadcast %3 : i32 to vector<16x16xi32>
    %6 = arith.addi %5, %4 : vector<16x16xi32>
    %7 = tpu.iota {dimensions = array<i32: 1>} : vector<16x16xi32>
    %8 = arith.cmpi eq, %6, %7 : vector<16x16xi32>
    %c0_3 = arith.constant 0 : index
    %c0_4 = arith.constant 0 : index
    %9 = vector.load %arg1[%c0_3, %c0_4] : memref<16x1xi32, #tpu.memory_space<vmem>>, vector<16x1xi32>
    %c0_5 = arith.constant 0 : index
    %c0_6 = arith.constant 0 : index
    %10 = vector.load %arg2[%c0_5, %c0_6] : memref<1x16xi32, #tpu.memory_space<vmem>>, vector<1x16xi32>
    %11 = vector.broadcast %9 : vector<16x1xi32> to vector<16x16xi32>
    %12 = vector.broadcast %10 : vector<1x16xi32> to vector<16x16xi32>
    %13 = arith.cmpi eq, %11, %12 : vector<16x16xi32>
    %cst_7 = arith.constant dense<true> : vector<16x16xi1>
    %14 = arith.xori %8, %cst_7 : vector<16x16xi1>
    %15 = arith.andi %13, %14 : vector<16x16xi1>
    %cst_8 = arith.constant dense<0xFF800000> : vector<16xf32>
    %16 = vector.multi_reduction <maximumf>, %2, %cst_8 [1] : vector<16x16xf32> to vector<16xf32>
    %17 = vector.shape_cast %16 : vector<16xf32> to vector<16x1xf32>
    %18 = vector.broadcast %17 : vector<16x1xf32> to vector<16x16xf32>
    %19 = arith.subf %2, %18 : vector<16x16xf32>
    %20 = math.exp %19 : vector<16x16xf32>
    %cst_9 = arith.constant 0.000000e+00 : f32
    %21 = vector.broadcast %cst_9 : f32 to vector<16x16xf32>
    %22 = arith.select %8, %21, %20 : vector<16x16xi1>, vector<16x16xf32>
    %cst_10 = arith.constant dense<0.000000e+00> : vector<16xf32>
    %23 = vector.multi_reduction <add>, %22, %cst_10 [1] : vector<16x16xf32> to vector<16xf32>
    %24 = vector.shape_cast %23 : vector<16xf32> to vector<16x1xf32>
    %25 = math.log %24 : vector<16x1xf32>
    %cst_11 = arith.constant 1.000000e+00 : f32
    %cst_12 = arith.constant 0.000000e+00 : f32
    %26 = vector.broadcast %cst_11 : f32 to vector<16x16xf32>
    %27 = vector.broadcast %cst_12 : f32 to vector<16x16xf32>
    %28 = arith.select %15, %26, %27 : vector<16x16xi1>, vector<16x16xf32>
    %cst_13 = arith.constant dense<0.000000e+00> : vector<16xf32>
    %29 = vector.multi_reduction <add>, %28, %cst_13 [1] : vector<16x16xf32> to vector<16xf32>
    %30 = vector.shape_cast %29 : vector<16xf32> to vector<16x1xf32>
    %cst_14 = arith.constant 0.000000e+00 : f32
    %31 = vector.broadcast %cst_14 : f32 to vector<16x16xf32>
    %32 = arith.select %15, %19, %31 : vector<16x16xi1>, vector<16x16xf32>
    %cst_15 = arith.constant dense<0.000000e+00> : vector<16xf32>
    %33 = vector.multi_reduction <add>, %32, %cst_15 [1] : vector<16x16xf32> to vector<16xf32>
    %34 = vector.shape_cast %33 : vector<16xf32> to vector<16x1xf32>
    %35 = arith.mulf %25, %30 : vector<16x1xf32>
    %36 = arith.subf %34, %35 : vector<16x1xf32>
    %37 = arith.divf %36, %30 : vector<16x1xf32>
    %cst_16 = arith.constant -1.000000e+00 : f32
    %38 = vector.broadcast %cst_16 : f32 to vector<16x1xf32>
    %39 = arith.mulf %38, %37 : vector<16x1xf32>
    %40 = vector.shape_cast %39 : vector<16x1xf32> to vector<16x1xf32>
    %41 = vector.broadcast %40 : vector<16x1xf32> to vector<16x128xf32>
    %c0_17 = arith.constant 0 : index
    %c0_18 = arith.constant 0 : index
    %42 = vector.load %arg5[%c0_17, %c0_18] : memref<16x128xf32, #tpu.memory_space<vmem>>, vector<16x128xf32>
    tpu.vector_store %arg5[%c0_17, %c0_18], %41 {strides = array<i32>} : memref<16x128xf32, #tpu.memory_space<vmem>>, vector<16x128xf32>,
    return
  }
  func.func @transform_0(%arg0: i32) -> (i32, i32) {
    %c0_i32 = arith.constant 0 : i32
    %c0_i32_0 = arith.constant 0 : i32
    return %arg0, %c0_i32 : i32, i32
  }
  func.func @transform_1(%arg0: i32) -> (i32, i32) {
    %c0_i32 = arith.constant 0 : i32
    %c0_i32_0 = arith.constant 0 : i32
    %c0_i32_1 = arith.constant 0 : i32
    return %c0_i32, %c0_i32_0 : i32, i32
  }
  func.func @transform_2(%arg0: i32) -> (i32, i32) {
    %c0_i32 = arith.constant 0 : i32
    %c0_i32_0 = arith.constant 0 : i32
    return %arg0, %c0_i32 : i32, i32
  }
  func.func @transform_3(%arg0: i32) -> (i32, i32) {
    %c0_i32 = arith.constant 0 : i32
    %c0_i32_0 = arith.constant 0 : i32
    %c0_i32_1 = arith.constant 0 : i32
    return %c0_i32, %c0_i32_0 : i32, i32
  }
  func.func @transform_4(%arg0: i32) -> (i32, i32) {
    %c0_i32 = arith.constant 0 : i32
    %c0_i32_0 = arith.constant 0 : i32
    return %arg0, %c0_i32 : i32, i32
  }
}

</mosaic_0001>

<bundles_post_ra>
// kernel: tpu_custom_call.1
= control target key start
LH: loop header
LB: loop body
LE: loop exit
PB: predicated region body
PF: predicated region fallthrough
CT: control target
= control target key end

     0   :  { %v239_v1 = vmov 0.0   ;;  %vm33_vm0 = vcmask 261120   ;;  %vm240_vm1 = vmmov 0   ;;  %s314_s0 = inlined_call_operand.vmem [shape: s32[16,1], index: 0, kind: input, shape index: {}]   ;;  %s315_s1 = inlined_call_operand.vmem [shape: s32[1,16], index: 1, kind: input, shape index: {}]   ;;  %s316_s2 = inlined_call_operand.vmem [shape: bf16[16,32], index: 2, kind: input, shape index: {}]   ;;  %s317_s3 = inlined_call_operand.vmem [shape: bf16[16,32], index: 3, kind: input, shape index: {}]   ;;  %s318_s4 = inlined_call_operand.hbm [shape: f32[16,128], index: 4, kind: output, shape index: {}]  }
   0x1   :  { %v201_v0 = vld [vmem:[%s317_s3] sm:$0xff]   ;;  %186 = vmatprep.subr.bf16.mxu0 %v239_v1  ;;  %188 = vmatprep.mubr.msk.bf16.mxu0 %vm240_vm1, %v239_v1 }
   0x2   :  { %v38_v2 = vsel %vm33_vm0, %v201_v0, 0 }
   0x3   :  { %9 = vsyncpa [#allocation3], 0  ;;  %187 = vmatpush3.bf16.xpose.msra.mxu0 %v38_v2  ;;  %v202_v3 = vld [vmem:[%s316_s2] sm:$0xff]   ;;  %v241_v5 = vmov 0   ;;  %v93_v6 = vld [vmem:[%s314_s0 + $0x8] sm:$0xff]  ;;  %vm111_vm2 = vcmask 130048   ;;  %v82_v14 = vlaneseq }
   0x4   :  { %v92_v4 = vld [vmem:[%s314_s0] sm:$0xff]  ;;  %199 = vset.pattern.permute.xlu1 %v241_v5  ;;  %200 = vset.pattern.permute.xlu0 %v241_v5  ;;  %vm242_vm5 = vmmov 1  }
   0x5   :  { %96 = vperm.xlu1 %199, %v92_v4   ;;  %v83_v18 = vshrl.u32 %v82_v14, 7  ;;  %v89_v19 = vand.u32 127, %v82_v14  ;;  %v183_v22 = vld [vmem:[%s315_s1] ss:$0 sm:$0xff]  ;;  %s243_s1 = smov [#allocation2]  }
   0x6   :  { %s169_s22 = sshll.u32 %s243_s1, 4  ;;  %s170_s22 = int_to_ptr.vmem [resolvable:$true] %s169_s22 }
   0x7   :  { %vm90_vm3 = vcmp.eq.s32.totalorder %v83_v18, %v89_v19  ;;  %v84_v24 = vadd.s32 8, %v83_v18  ;;  %s215_s23 = scalar_lea.vmem %s170_s22, 256  ;;  %p220_p1 = scmp.lt.s32.totalorder %s170_s22, %s170_s22 }
   0x8   :  { %vm107_vm6 = vmxor %vm90_vm3, %vm242_vm5  ;;  %p216_p0 = scmp.ne.s32.totalorder %s170_s22, %s215_s23  ;;  %p221_p2 = scmp.lt.s32.totalorder %s215_s23, %s215_s23 }
   0x9   :  { %99 = vperm.xlu1 %199, %v93_v6   ;;  %vm91_vm8 = vcmp.eq.s32.totalorder %v84_v24, %v89_v19 }
   0xa   :  { %189 = vmatmul.mubr.msk.bf16.vlgmr.msra.gmra.mrb[0].mxu0 %vm33_vm0, %v202_v3  ;;  %vm108_vm10 = vmxor %vm91_vm8, %vm242_vm5  ;;  %p222_p3 = por %p221_p2, %p220_p1 }
   0xc   :  { %p223_p4 = pnand %p222_p3, %p216_p0 }
  0x84   :  { %v97_v23 = vpop.permute.xlu1 %96 }
  0x85   :  { %vm105_vm4 = vcmp.eq.s32.totalorder %v97_v23, %v183_v22 }
  0x86   :  { %vm288_vm7 = vmand %vm105_vm4, %vm107_vm6 }
  0x87   :  { %v136_v29 = vsel %vm288_vm7, 1.0, %v239_v1 }
  0x88   :  { %v100_v27 = vpop.permute.xlu1 %99  ;;  %v138_v32 = vsel %vm111_vm2, %v136_v29, 0.0 }
  0x89   :  { %vm106_vm9 = vcmp.eq.s32.totalorder %v100_v27, %v183_v22 }
  0x8a   :  { %vm110_vm11 = vmand %vm106_vm9, %vm108_vm10 }
  0x8b   :  { %v137_v35 = vsel %vm110_vm11, 1.0, %v239_v1 }
  0x8c   :  { %v141_v36 = vsel %vm111_vm2, %v137_v35, 0.0 }
  0xdd   :  { %v74_v7 = vpop.f32.mrb[0].mxu0 }
  0xde   :  { %v190_v8 = vpop.f32.mrb[1].mxu0  ;;  %v112_v9 = vsel %vm111_vm2, %v74_v7, -inf }
  0xdf   :  { %113 = vmax.xlane.f32.xlu0 %v112_v9  ;;  %v77_v10 = vpop.f32.mrb[2].mxu0 }
  0xe0   :  { %v191_v11 = vpop.f32.mrb[3].mxu0  ;;  %v115_v12 = vsel %vm111_vm2, %v77_v10, -inf }
  0xe3   :  { %116 = vmax.xlane.f32.xlu0 %v115_v12 }
 0x16c   :  { %v114_v13 = vpop.xlane.xlu0 %113 }
 0x16d   :  { %v118_v15 = vsub.f32 %v74_v7, %v114_v13 }
 0x16f   :  { %v120_v16 = vmul.f32 1.442695, %v118_v15  ;;  %v144_v37 = vsel %vm288_vm7, %v118_v15, 0.0 }
 0x170   :  { %v117_v17 = vpop.xlane.xlu0 %116  ;;  %v146_v38 = vsel %vm111_vm2, %v144_v37, 0.0 }
 0x171   :  { %203 = vpow2.f32 %v120_v16  ;;  %v119_v20 = vsub.f32 %v77_v10, %v117_v17 }
 0x173   :  { %v122_v21 = vmul.f32 1.442695, %v119_v20  ;;  %v145_v39 = vsel %vm110_vm11, %v119_v20, 0.0 }
 0x174   :  { %v149_v40 = vsel %vm111_vm2, %v145_v39, 0.0 }
 0x175   :  { %205 = vpow2.f32 %v122_v21 }
 0x17b   :  { %v204_v25 = vpop.eup %203 }
 0x17c   :  { %v124_v28 = vsel %vm90_vm3, 0.0, %v204_v25 }
 0x17d   :  { %v126_v30 = vsel %vm111_vm2, %v124_v28, 0.0 }
 0x17e   :  { %127 = vadd.xlane.f32.xlu0 %v126_v30 }
 0x17f   :  { %v206_v31 = vpop.eup %205 }
 0x180   :  { %v125_v33 = vsel %vm91_vm8, 0.0, %v206_v31 }
 0x181   :  { %v129_v34 = vsel %vm111_vm2, %v125_v33, 0.0 }
 0x182   :  { %139 = vadd.xlane.f32.xlu0 %v138_v32  ;;  %130 = vadd.xlane.f32.xlu1 %v129_v34 }
 0x186   :  { %142 = vadd.xlane.f32.xlu0 %v141_v36 }
 0x18a   :  { %147 = vadd.xlane.f32.xlu0 %v146_v38 }
 0x18e   :  { %150 = vadd.xlane.f32.xlu0 %v149_v40 }
 0x20b   :  { %v128_v41 = vpop.xlane.xlu0 %127 }
 0x20c   :  { %207 = vlog2.f32 %v128_v41 }
 0x20f   :  { %v131_v42 = vpop.xlane.xlu1 %130  ;;  %v140_v43 = vpop.xlane.xlu0 %139 }
 0x210   :  { %209 = vlog2.f32 %v131_v42 }
 0x211   :  { %211 = vrcp.f32 %v140_v43 }
 0x213   :  { %v143_v44 = vpop.xlane.xlu0 %142 }
 0x214   :  { %213 = vrcp.f32 %v143_v44 }
 0x216   :  { %v208_v45 = vpop.eup %207 }
 0x217   :  { %v133_v46 = vmul.f32 0.6931472, %v208_v45  ;;  %v148_v47 = vpop.xlane.xlu0 %147 }
 0x219   :  { %v152_v48 = vmul.f32 %v140_v43, %v133_v46 }
 0x21a   :  { %v210_v49 = vpop.eup %209 }
 0x21b   :  { %v212_v50 = vpop.eup %211  ;;  %v135_v51 = vmul.f32 0.6931472, %v210_v49  ;;  %v154_v52 = vsub.f32 %v148_v47, %v152_v48  ;;  %v151_v55 = vpop.xlane.xlu0 %150 }
 0x21d   :  { %v153_v53 = vmul.f32 %v143_v44, %v135_v51  ;;  %v157_v54 = vmul.f32 %v212_v50, %v154_v52 }
 0x21e   :  { %v214_v58 = vpop.eup %213 }
 0x21f   :  { %v160_v56 = vmul.f32 -1.0, %v157_v54  ;;  %v155_v57 = vsub.f32 %v151_v55, %v153_v53 }
 0x221   :  { %162 = vst [vmem:[#allocation2] sm:$0xff] %v160_v56  ;;  %v159_v59 = vmul.f32 %v214_v58, %v155_v57 }
 0x223   :  { %v161_v60 = vmul.f32 -1.0, %v159_v59 }
 0x225   :  { %163 = vst [vmem:[#allocation2 + $0x8] sm:$0xff] %v161_v60 }
 0x226   :  { %226 = shalt.err (!%p223_p4)
}
 0x227   :  { %s227_s26 = scalar_lea.hbm %s318_s4, 256 }
 0x228   :  { %p228_p5 = scmp.ne.s32.totalorder %s318_s4, %s227_s26  ;;  %p231_p6 = scmp.lt.u32.totalorder %s227_s26, %s318_s4 }
 0x22a   :  { %p233_p7 = pnand %p231_p6, %p228_p5 }
 0x22c   :  { %236 = shalt.err (!%p233_p7)
}
 0x22d   :  { %s244_s5 = smov 128   ;;  %s245_s6 = smov 8  }
 0x22e   :  { %175 = dma.vmem_to_hbm [thread:$0]  %s170_s22, 256, %s318_s4, [#allocation3], %s244_s5, %s244_s5, %s245_s6  }
 0x22f   :  { %237 = dma.done.wait [#allocation3], 256  }
 0x230   :  { %238 = vsyncadd [#allocation3], 4294967040 }
 0x231   :  { %179 = vsyncpa [#allocation3], 1 }

// kernel: tpu_custom_call.1
= control target key start
LH: loop header
LB: loop body
LE: loop exit
PB: predicated region body
PF: predicated region fallthrough
CT: control target
= control target key end

     0   :  { %v239_v1 = vmov 0.0   ;;  %vm33_vm0 = vcmask 261120   ;;  %vm240_vm1 = vmmov 0   ;;  %s314_s0 = inlined_call_operand.vmem [shape: s32[16,1], index: 0, kind: input, shape index: {}]   ;;  %s315_s1 = inlined_call_operand.vmem [shape: s32[1,16], index: 1, kind: input, shape index: {}]   ;;  %s316_s2 = inlined_call_operand.vmem [shape: bf16[16,32], index: 2, kind: input, shape index: {}]   ;;  %s317_s3 = inlined_call_operand.vmem [shape: bf16[16,32], index: 3, kind: input, shape index: {}]   ;;  %s318_s4 = inlined_call_operand.hbm [shape: f32[16,128], index: 4, kind: output, shape index: {}]  }
   0x1   :  { %v201_v0 = vld [vmem:[%s317_s3] sm:$0xff]   ;;  %186 = vmatprep.subr.bf16.mxu0 %v239_v1  ;;  %188 = vmatprep.mubr.msk.bf16.mxu0 %vm240_vm1, %v239_v1 }
   0x2   :  { %v38_v2 = vsel %vm33_vm0, %v201_v0, 0 }
   0x3   :  { %9 = vsyncpa [#allocation3], 0  ;;  %187 = vmatpush3.bf16.xpose.msra.mxu0 %v38_v2  ;;  %v202_v3 = vld [vmem:[%s316_s2] sm:$0xff]   ;;  %v241_v5 = vmov 0   ;;  %v93_v6 = vld [vmem:[%s314_s0 + $0x8] sm:$0xff]  ;;  %vm111_vm2 = vcmask 130048   ;;  %v82_v14 = vlaneseq }
   0x4   :  { %v92_v4 = vld [vmem:[%s314_s0] sm:$0xff]  ;;  %199 = vset.pattern.permute.xlu1 %v241_v5  ;;  %200 = vset.pattern.permute.xlu0 %v241_v5  ;;  %vm242_vm5 = vmmov 1  }
   0x5   :  { %96 = vperm.xlu1 %199, %v92_v4   ;;  %v83_v18 = vshrl.u32 %v82_v14, 7  ;;  %v89_v19 = vand.u32 127, %v82_v14  ;;  %v183_v22 = vld [vmem:[%s315_s1] ss:$0 sm:$0xff]  ;;  %s243_s1 = smov [#allocation2]  }
   0x6   :  { %s169_s22 = sshll.u32 %s243_s1, 4  ;;  %s170_s22 = int_to_ptr.vmem [resolvable:$true] %s169_s22 }
   0x7   :  { %vm90_vm3 = vcmp.eq.s32.totalorder %v83_v18, %v89_v19  ;;  %v84_v24 = vadd.s32 8, %v83_v18  ;;  %s215_s23 = scalar_lea.vmem %s170_s22, 256  ;;  %p220_p1 = scmp.lt.s32.totalorder %s170_s22, %s170_s22 }
   0x8   :  { %vm107_vm6 = vmxor %vm90_vm3, %vm242_vm5  ;;  %p216_p0 = scmp.ne.s32.totalorder %s170_s22, %s215_s23  ;;  %p221_p2 = scmp.lt.s32.totalorder %s215_s23, %s215_s23 }
   0x9   :  { %99 = vperm.xlu1 %199, %v93_v6   ;;  %vm91_vm8 = vcmp.eq.s32.totalorder %v84_v24, %v89_v19 }
   0xa   :  { %189 = vmatmul.mubr.msk.bf16.vlgmr.msra.gmra.mrb[0].mxu0 %vm33_vm0, %v202_v3  ;;  %vm108_vm10 = vmxor %vm91_vm8, %vm242_vm5  ;;  %p222_p3 = por %p221_p2, %p220_p1 }
   0xc   :  { %p223_p4 = pnand %p222_p3, %p216_p0 }
  0x84   :  { %v97_v23 = vpop.permute.xlu1 %96 }
  0x85   :  { %vm105_vm4 = vcmp.eq.s32.totalorder %v97_v23, %v183_v22 }
  0x86   :  { %vm288_vm7 = vmand %vm105_vm4, %vm107_vm6 }
  0x87   :  { %v136_v29 = vsel %vm288_vm7, 1.0, %v239_v1 }
  0x88   :  { %v100_v27 = vpop.permute.xlu1 %99  ;;  %v138_v32 = vsel %vm111_vm2, %v136_v29, 0.0 }
  0x89   :  { %vm106_vm9 = vcmp.eq.s32.totalorder %v100_v27, %v183_v22 }
  0x8a   :  { %vm110_vm11 = vmand %vm106_vm9, %vm108_vm10 }
  0x8b   :  { %v137_v35 = vsel %vm110_vm11, 1.0, %v239_v1 }
  0x8c   :  { %v141_v36 = vsel %vm111_vm2, %v137_v35, 0.0 }
  0xdd   :  { %v74_v7 = vpop.f32.mrb[0].mxu0 }
  0xde   :  { %v190_v8 = vpop.f32.mrb[1].mxu0  ;;  %v112_v9 = vsel %vm111_vm2, %v74_v7, -inf }
  0xdf   :  { %113 = vmax.xlane.f32.xlu0 %v112_v9  ;;  %v77_v10 = vpop.f32.mrb[2].mxu0 }
  0xe0   :  { %v191_v11 = vpop.f32.mrb[3].mxu0  ;;  %v115_v12 = vsel %vm111_vm2, %v77_v10, -inf }
  0xe3   :  { %116 = vmax.xlane.f32.xlu0 %v115_v12 }
 0x16c   :  { %v114_v13 = vpop.xlane.xlu0 %113 }
 0x16d   :  { %v118_v15 = vsub.f32 %v74_v7, %v114_v13 }
 0x16f   :  { %v120_v16 = vmul.f32 1.442695, %v118_v15  ;;  %v144_v37 = vsel %vm288_vm7, %v118_v15, 0.0 }
 0x170   :  { %v117_v17 = vpop.xlane.xlu0 %116  ;;  %v146_v38 = vsel %vm111_vm2, %v144_v37, 0.0 }
 0x171   :  { %203 = vpow2.f32 %v120_v16  ;;  %v119_v20 = vsub.f32 %v77_v10, %v117_v17 }
 0x173   :  { %v122_v21 = vmul.f32 1.442695, %v119_v20  ;;  %v145_v39 = vsel %vm110_vm11, %v119_v20, 0.0 }
 0x174   :  { %v149_v40 = vsel %vm111_vm2, %v145_v39, 0.0 }
 0x175   :  { %205 = vpow2.f32 %v122_v21 }
 0x17b   :  { %v204_v25 = vpop.eup %203 }
 0x17c   :  { %v124_v28 = vsel %vm90_vm3, 0.0, %v204_v25 }
 0x17d   :  { %v126_v30 = vsel %vm111_vm2, %v124_v28, 0.0 }
 0x17e   :  { %127 = vadd.xlane.f32.xlu0 %v126_v30 }
 0x17f   :  { %v206_v31 = vpop.eup %205 }
 0x180   :  { %v125_v33 = vsel %vm91_vm8, 0.0, %v206_v31 }
 0x181   :  { %v129_v34 = vsel %vm111_vm2, %v125_v33, 0.0 }
 0x182   :  { %139 = vadd.xlane.f32.xlu0 %v138_v32  ;;  %130 = vadd.xlane.f32.xlu1 %v129_v34 }
 0x186   :  { %142 = vadd.xlane.f32.xlu0 %v141_v36 }
 0x18a   :  { %147 = vadd.xlane.f32.xlu0 %v146_v38 }
 0x18e   :  { %150 = vadd.xlane.f32.xlu0 %v149_v40 }
 0x20b   :  { %v128_v41 = vpop.xlane.xlu0 %127 }
 0x20c   :  { %207 = vlog2.f32 %v128_v41 }
 0x20f   :  { %v131_v42 = vpop.xlane.xlu1 %130  ;;  %v140_v43 = vpop.xlane.xlu0 %139 }
 0x210   :  { %209 = vlog2.f32 %v131_v42 }
 0x211   :  { %211 = vrcp.f32 %v140_v43 }
 0x213   :  { %v143_v44 = vpop.xlane.xlu0 %142 }
 0x214   :  { %213 = vrcp.f32 %v143_v44 }
 0x216   :  { %v208_v45 = vpop.eup %207 }
 0x217   :  { %v133_v46 = vmul.f32 0.6931472, %v208_v45  ;;  %v148_v47 = vpop.xlane.xlu0 %147 }
 0x219   :  { %v152_v48 = vmul.f32 %v140_v43, %v133_v46 }
 0x21a   :  { %v210_v49 = vpop.eup %209 }
 0x21b   :  { %v212_v50 = vpop.eup %211  ;;  %v135_v51 = vmul.f32 0.6931472, %v210_v49  ;;  %v154_v52 = vsub.f32 %v148_v47, %v152_v48  ;;  %v151_v55 = vpop.xlane.xlu0 %150 }
 0x21d   :  { %v153_v53 = vmul.f32 %v143_v44, %v135_v51  ;;  %v157_v54 = vmul.f32 %v212_v50, %v154_v52 }
 0x21e   :  { %v214_v58 = vpop.eup %213 }
 0x21f   :  { %v160_v56 = vmul.f32 -1.0, %v157_v54  ;;  %v155_v57 = vsub.f32 %v151_v55, %v153_v53 }
 0x221   :  { %162 = vst [vmem:[#allocation2] sm:$0xff] %v160_v56  ;;  %v159_v59 = vmul.f32 %v214_v58, %v155_v57 }
 0x223   :  { %v161_v60 = vmul.f32 -1.0, %v159_v59 }
 0x225   :  { %163 = vst [vmem:[#allocation2 + $0x8] sm:$0xff] %v161_v60 }
 0x226   :  { %226 = shalt.err (!%p223_p4)
}
 0x227   :  { %s227_s26 = scalar_lea.hbm %s318_s4, 256 }
 0x228   :  { %p228_p5 = scmp.ne.s32.totalorder %s318_s4, %s227_s26  ;;  %p231_p6 = scmp.lt.u32.totalorder %s227_s26, %s318_s4 }
 0x22a   :  { %p233_p7 = pnand %p231_p6, %p228_p5 }
 0x22c   :  { %236 = shalt.err (!%p233_p7)
}
 0x22d   :  { %s244_s5 = smov 128   ;;  %s245_s6 = smov 8  }
 0x22e   :  { %175 = dma.vmem_to_hbm [thread:$0]  %s170_s22, 256, %s318_s4, [#allocation3], %s244_s5, %s244_s5, %s245_s6  }
 0x22f   :  { %237 = dma.done.wait [#allocation3], 256  }
 0x230   :  { %238 = vsyncadd [#allocation3], 4294967040 }
 0x231   :  { %179 = vsyncpa [#allocation3], 1 }

</bundles_post_ra>
